<compile_context>
chip_gen: v6e
topology: v6e:2x2x1
jax: 0.10.0
libtpu: 0.0.40
codegen_flags: <defaults>
</compile_context>

<pallas_src>
import functools

import jax
import jax.numpy as jnp
from jax.experimental import pallas as pl
from jax.experimental.pallas import tpu as pltpu


def _round_up(x, m):
    return ((x + m - 1) // m) * m


def _vmem_capacity_bytes():
    """Generation-aware VMEM capacity (v5e/v6e: 128 MiB, v7x: 64 MiB)."""
    try:
        return int(pltpu.get_tpu_info().vmem_capacity_bytes)
    except Exception:
        return 64 << 20  # conservative (v7x-sized) fallback


def _attention_kernel(v_ref, q_ref, w1v_ref, w1q_ref, b1_ref, w2_ref, o_ref,
                      *, k_orig, h_chunk):
    # v_ref : (TB, K_pad, vdp) bf16    q_ref : (TB, qdp) bf16
    # w1v   : (vdp, H_pad) bf16        w1q   : (qdp, H_pad) bf16
    # b1    : (1, H_pad) f32           w2    : (1, H_pad) f32
    # o_ref : (K_pad, TB) f32
    TB, K_pad, vdp = v_ref.shape
    H_pad = b1_ref.shape[1]

    # Relayout-free flatten: K_pad % 8 == 0 and vdp % 128 == 0.
    v_flat = v_ref[...].reshape(TB * K_pad, vdp)
    q_blk = q_ref[...]

    # Hidden layer processed in H chunks: live f32 temporary is (TB, K_pad, hc).
    logits = jnp.zeros((TB, K_pad), jnp.float32)
    for h0 in range(0, H_pad, h_chunk):
        hc = min(h_chunk, H_pad - h0)
        hv = jnp.dot(v_flat, w1v_ref[:, h0:h0 + hc],
                     preferred_element_type=jnp.float32)               # (TB*K, hc)  MXU
        # Fold b1 into the per-batch term BEFORE broadcasting over K.
        hq = jnp.dot(q_blk, w1q_ref[:, h0:h0 + hc],
                     preferred_element_type=jnp.float32) + b1_ref[:, h0:h0 + hc]
        h = jnp.maximum(hv.reshape(TB, K_pad, hc) + hq[:, None, :], 0.0)  # ReLU, f32 VPU
        # Second linear (out_features = 1): VPU multiply + lane reduce over H.
        # b2 omitted (no-op under softmax).
        logits = logits + jnp.sum(h * w2_ref[:, h0:h0 + hc], axis=-1)     # (TB, K_pad)

    # Softmax over K: K on sublanes, batch tile on lanes (lane-dense store).
    lt = logits.T                                                          # (K_pad, TB)
    if k_orig != K_pad:
        row = jax.lax.broadcasted_iota(jnp.int32, lt.shape, 0)
        lt = jnp.where(row < k_orig, lt, -jnp.inf)                         # mask padded K
    m = jnp.max(lt, axis=0, keepdims=True)                                 # (1, TB)
    e = jnp.exp(lt - m)
    s = jnp.sum(e, axis=0, keepdims=True)
    o_ref[...] = e * pl.reciprocal(s, approx=True)                         # EUP rcp


def attention_forward(v, q, w1, b1, w2, b2=None, *, batch_tile=512, h_chunk=512):
    """v: [B,K,v_dim]  q: [B,q_dim]  w1: [v_dim+q_dim,H]  b1: [H]  w2: [H,1]  b2: [1].

    Returns softmax attention weights of shape [B, K, 1] (float32).
    b2 is accepted for API parity but unused: softmax(logits + c) == softmax(logits).
    """
    del b2
    B, K, v_dim = v.shape
    q_dim = q.shape[1]
    H = w1.shape[1]

    # --- pad every tiled dim to hardware granules (zero padding is exact). ---
    K_pad = _round_up(K, 8)
    vdp = _round_up(v_dim, 128)
    qdp = _round_up(q_dim, 128)
    H_pad = _round_up(H, 128)
    Hc = max(128, (min(h_chunk, H_pad) // 128) * 128)

    w1v = jnp.zeros((vdp, H_pad), jnp.float32).at[:v_dim, :H].set(w1[:v_dim, :])
    w1q = jnp.zeros((qdp, H_pad), jnp.float32).at[:q_dim, :H].set(w1[v_dim:, :])
    b1p = jnp.zeros((1, H_pad), jnp.float32).at[0, :H].set(b1.reshape(-1))
    w2p = jnp.zeros((1, H_pad), jnp.float32).at[0, :H].set(w2.reshape(-1))

    # --- VMEM-aware, generation-aware batch tile. ---
    cap = _vmem_capacity_bytes()
    budget = int(cap * 0.70)

    def est(tb):
        return (2 * tb * (K_pad * vdp + qdp) * 2          # bf16 v/q blocks, double-buffered
                + 2 * (vdp + qdp) * H_pad * 2             # bf16 resident weights (2 bufs)
                + 2 * 2 * H_pad * 4                       # b1 / w2 (f32)
                + 2 * K_pad * tb * 4                      # f32 output block, double-buffered
                + tb * K_pad * (Hc + 3) * 4 + tb * Hc * 4)  # live f32 temporaries

    tb = max(128, (batch_tile // 128) * 128)
    while tb > 128 and est(tb) > budget:
        tb //= 2

    B8 = _round_up(B, 8)
    if B8 <= tb:
        half = _round_up(-(-B // 2), 128)
        if B >= 256 and half <= tb:
            TB = half          # >= 2 grid steps -> both v7x TensorCores get work
        else:
            TB = B8            # single tile: block dims == full array dims
    else:
        TB = tb                # multiple of 128 -> lane-dense (K_pad, TB) stores
    B_pad = _round_up(B, TB)
    num_tiles = B_pad // TB

    # Pad + cast activations; MXU is bf16-native, accumulation stays f32.
    v_p = jnp.zeros((B_pad, K_pad, vdp), jnp.bfloat16).at[:B, :K, :v_dim].set(
        v.astype(jnp.bfloat16))
    q_p = jnp.zeros((B_pad, qdp), jnp.bfloat16).at[:B, :q_dim].set(
        q.astype(jnp.bfloat16))
    w1v = w1v.astype(jnp.bfloat16)
    w1q = w1q.astype(jnp.bfloat16)

    grid_spec = pltpu.PrefetchScalarGridSpec(
        num_scalar_prefetch=0,
        grid=(num_tiles,),
        in_specs=[
            pl.BlockSpec((TB, K_pad, vdp), lambda b: (b, 0, 0)),   # v    (per-tile)
            pl.BlockSpec((TB, qdp),        lambda b: (b, 0)),      # q    (per-tile)
            pl.BlockSpec((vdp, H_pad),     lambda b: (0, 0)),      # W1_v (resident)
            pl.BlockSpec((qdp, H_pad),     lambda b: (0, 0)),      # W1_q (resident)
            pl.BlockSpec((1, H_pad),       lambda b: (0, 0)),      # b1   (resident)
            pl.BlockSpec((1, H_pad),       lambda b: (0, 0)),      # w2   (resident)
        ],
        # Lane-dense output slab: K on sublanes, batch tile on lanes.
        out_specs=pl.BlockSpec((K_pad, TB), lambda b: (0, b)),
    )

    est_bytes = est(TB)
    vmem_limit = None
    if est_bytes > (30 << 20):
        vmem_limit = int(min(est_bytes * 1.25, cap * 0.9))

    flops = (2 * B_pad * K_pad * vdp * H_pad + 2 * B_pad * qdp * H_pad
             + 3 * B_pad * K_pad * H_pad + 8 * B_pad * K_pad)
    bytes_accessed = (2 * B_pad * K_pad * vdp + 2 * B_pad * qdp
                      + 2 * (vdp + qdp) * H_pad + 8 * H_pad
                      + 4 * K_pad * B_pad)
    cost = pl.CostEstimate(flops=flops, transcendentals=B_pad * K_pad,
                           bytes_accessed=bytes_accessed)

    kernel = functools.partial(_attention_kernel, k_orig=K, h_chunk=Hc)
    out_kb = pl.pallas_call(
        kernel,
        out_shape=jax.ShapeDtypeStruct((K_pad, B_pad), jnp.float32),
        grid_spec=grid_spec,
        compiler_params=pltpu.CompilerParams(
            dimension_semantics=("parallel",),
            vmem_limit_bytes=vmem_limit),
        cost_estimate=cost,
    )(v_p, q_p, w1v, w1q, b1p, w2p)

    # (K_pad, B_pad) -> [B, K, 1]; drop padding.
    # TODO(synk): consumers that can take a (K, B) slab directly would skip this
    # small XLA transpose.
    return out_kb[:K, :B].T[:, :, None]


def _weight_norm_effective(v_mat, g):
    """weight_norm with dim=None: W = g * V / ||V||_F  (g is a scalar)."""
    return g * v_mat / jnp.sqrt(jnp.sum(v_mat * v_mat))


def _reference_forward(v, q, w1, b1, w2, b2):
    B, K, _ = v.shape
    x = jnp.concatenate([v, jnp.broadcast_to(q[:, None, :], (B, K, q.shape[1]))], axis=2)
    h = jnp.maximum(jnp.einsum("bkc,ch->bkh", x, w1) + b1, 0.0)
    logits = jnp.einsum("bkh,ho->bko", h, w2) + b2
    return jax.nn.softmax(logits, axis=1)


if __name__ == "__main__":
    # Small shapes consistent with the module's forward.
    B, K, v_dim, q_dim, num_hid = 2, 8, 16, 16, 32

    key = jax.random.PRNGKey(0)
    kv, kq, kw1, kb1, kw2, kb2, kg1, kg2 = jax.random.split(key, 8)

    v = jax.random.normal(kv, (B, K, v_dim), dtype=jnp.float32)
    q = jax.random.normal(kq, (B, q_dim), dtype=jnp.float32)

    # Deterministic parameter init (stored as [in, out] for the kernel).
    in1 = v_dim + q_dim
    w1_v = jax.random.uniform(kw1, (in1, num_hid), jnp.float32, -1.0, 1.0) / jnp.sqrt(in1)
    b1 = jax.random.uniform(kb1, (num_hid,), jnp.float32, -1.0, 1.0) / jnp.sqrt(in1)
    w2_v = jax.random.uniform(kw2, (num_hid, 1), jnp.float32, -1.0, 1.0) / jnp.sqrt(num_hid)
    b2 = jax.random.uniform(kb2, (1,), jnp.float32, -1.0, 1.0) / jnp.sqrt(num_hid)
    g1 = 1.0 + 0.1 * jax.random.normal(kg1, ())   # weight_norm scalar gains (dim=None)
    g2 = 1.0 + 0.1 * jax.random.normal(kg2, ())

    w1 = _weight_norm_effective(w1_v, g1)          # [in1, num_hid]
    w2 = _weight_norm_effective(w2_v, g2)          # [num_hid, 1]

    out = attention_forward(v, q, w1, b1, w2, b2)
    out = jax.block_until_ready(out)

    ref = _reference_forward(v, q, w1, b1, w2, b2)
    assert out.shape == (B, K, 1)
    # bf16 MXU inputs + approx reciprocal -> relaxed tolerance vs f32 reference.
    assert jnp.allclose(out, ref, atol=2e-2, rtol=2e-2), "mismatch vs pure-JAX reference"

    print("KERNEL_OK")
</pallas_src>

<mosaic_0001>
module attributes {stable_mosaic.version = 11 : i64} {
  func.func @_attention_kernel(%arg0: i32, %arg1: memref<8x8x128xbf16, #tpu.memory_space<vmem>>, %arg2: memref<8x128xbf16, #tpu.memory_space<vmem>>, %arg3: memref<128x128xbf16, #tpu.memory_space<vmem>>, %arg4: memref<128x128xbf16, #tpu.memory_space<vmem>>, %arg5: memref<1x128xf32, #tpu.memory_space<vmem>>, %arg6: memref<1x128xf32, #tpu.memory_space<vmem>>, %arg7: memref<8x8xf32, #tpu.memory_space<vmem>>) attributes {dimension_semantics = [#tpu.dimension_semantics<parallel>], iteration_bounds = array<i64: 1>, scalar_prefetch = 0 : i64, scratch_operands = 0 : i64, tpu.core_type = #tpu.core_type<tc>, window_params = [{transform_indices = @transform_0, window_bounds = array<i64: 8, 8, 128>}, {transform_indices = @transform_1, window_bounds = array<i64: 8, 128>}, {pipeline_mode = #tpu.pipeline_mode<synchronous>, transform_indices = @transform_2, window_bounds = array<i64: 128, 128>}, {pipeline_mode = #tpu.pipeline_mode<synchronous>, transform_indices = @transform_3, window_bounds = array<i64: 128, 128>}, {pipeline_mode = #tpu.pipeline_mode<synchronous>, transform_indices = @transform_4, window_bounds = array<i64: 1, 128>}, {pipeline_mode = #tpu.pipeline_mode<synchronous>, transform_indices = @transform_5, window_bounds = array<i64: 1, 128>}, {transform_indices = @transform_6, window_bounds = array<i64: 8, 8>}]} {
    %c0 = arith.constant 0 : index
    %c0_0 = arith.constant 0 : index
    %c0_1 = arith.constant 0 : index
    %0 = vector.load %arg1[%c0, %c0_0, %c0_1] : memref<8x8x128xbf16, #tpu.memory_space<vmem>>, vector<8x8x128xbf16>
    %1 = vector.shape_cast %0 : vector<8x8x128xbf16> to vector<64x128xbf16>
    %c0_2 = arith.constant 0 : index
    %c0_3 = arith.constant 0 : index
    %2 = vector.load %arg2[%c0_2, %c0_3] : memref<8x128xbf16, #tpu.memory_space<vmem>>, vector<8x128xbf16>
    %cst = arith.constant 0.000000e+00 : f32
    %3 = vector.broadcast %cst : f32 to vector<8x8xf32>
    %c0_4 = arith.constant 0 : index
    %c0_5 = arith.constant 0 : index
    %4 = vector.load %arg3[%c0_4, %c0_5] : memref<128x128xbf16, #tpu.memory_space<vmem>>, vector<128x128xbf16>
    %cst_6 = arith.constant dense<0.000000e+00> : vector<64x128xf32>
    %5 = tpu.matmul %1, %4, %cst_6 {dimension_numbers = #tpu.dot_dimension_numbers<[1], [0], [0], [1], [0, 0, 1, 1], [], []>} : vector<64x128xbf16>, vector<128x128xbf16>, vector<64x128xf32> -> vector<64x128xf32>
    %c0_7 = arith.constant 0 : index
    %c0_8 = arith.constant 0 : index
    %6 = vector.load %arg4[%c0_7, %c0_8] : memref<128x128xbf16, #tpu.memory_space<vmem>>, vector<128x128xbf16>
    %cst_9 = arith.constant dense<0.000000e+00> : vector<8x128xf32>
    %7 = tpu.matmul %2, %6, %cst_9 {dimension_numbers = #tpu.dot_dimension_numbers<[1], [0], [0], [1], [0, 0, 1, 1], [], []>} : vector<8x128xbf16>, vector<128x128xbf16>, vector<8x128xf32> -> vector<8x128xf32>
    %c0_10 = arith.constant 0 : index
    %c0_11 = arith.constant 0 : index
    %8 = vector.load %arg5[%c0_10, %c0_11] : memref<1x128xf32, #tpu.memory_space<vmem>>, vector<1x128xf32>
    %9 = vector.broadcast %8 : vector<1x128xf32> to vector<8x128xf32>
    %10 = arith.addf %7, %9 : vector<8x128xf32>
    %11 = vector.shape_cast %5 : vector<64x128xf32> to vector<8x8x128xf32>
    %12 = vector.shape_cast %10 : vector<8x128xf32> to vector<8x1x128xf32>
    %13 = vector.broadcast %12 : vector<8x1x128xf32> to vector<8x8x128xf32>
    %14 = arith.addf %11, %13 : vector<8x8x128xf32>
    %cst_12 = arith.constant 0.000000e+00 : f32
    %15 = vector.broadcast %cst_12 : f32 to vector<8x8x128xf32>
    %16 = arith.maximumf %14, %15 : vector<8x8x128xf32>
    %c0_13 = arith.constant 0 : index
    %c0_14 = arith.constant 0 : index
    %17 = vector.load %arg6[%c0_13, %c0_14] : memref<1x128xf32, #tpu.memory_space<vmem>>, vector<1x128xf32>
    %18 = vector.shape_cast %17 : vector<1x128xf32> to vector<1x1x128xf32>
    %19 = vector.broadcast %18 : vector<1x1x128xf32> to vector<8x8x128xf32>
    %20 = arith.mulf %16, %19 : vector<8x8x128xf32>
    %cst_15 = arith.constant dense<0.000000e+00> : vector<8x8xf32>
    %21 = vector.multi_reduction <add>, %20, %cst_15 [2] : vector<8x8x128xf32> to vector<8x8xf32>
    %22 = arith.addf %3, %21 : vector<8x8xf32>
    %23 = tpu.transpose %22, [1, 0] : vector<8x8xf32> -> vector<8x8xf32>
    %cst_16 = arith.constant dense<0xFF800000> : vector<8xf32>
    %24 = vector.multi_reduction <maximumf>, %23, %cst_16 [0] : vector<8x8xf32> to vector<8xf32>
    %25 = vector.shape_cast %24 : vector<8xf32> to vector<1x8xf32>
    %26 = vector.broadcast %25 : vector<1x8xf32> to vector<8x8xf32>
    %27 = arith.subf %23, %26 : vector<8x8xf32>
    %28 = math.exp %27 : vector<8x8xf32>
    %cst_17 = arith.constant dense<0.000000e+00> : vector<8xf32>
    %29 = vector.multi_reduction <add>, %28, %cst_17 [0] : vector<8x8xf32> to vector<8xf32>
    %30 = vector.shape_cast %29 : vector<8xf32> to vector<1x8xf32>
    %31 = tpu.reciprocal %30 {approx = true} : vector<1x8xf32> -> vector<1x8xf32>
    %32 = vector.broadcast %31 : vector<1x8xf32> to vector<8x8xf32>
    %33 = arith.mulf %28, %32 : vector<8x8xf32>
    %c0_18 = arith.constant 0 : index
    %c0_19 = arith.constant 0 : index
    %34 = vector.load %arg7[%c0_18, %c0_19] : memref<8x8xf32, #tpu.memory_space<vmem>>, vector<8x8xf32>
    tpu.vector_store %arg7[%c0_18, %c0_19], %33 {strides = array<i32>} : memref<8x8xf32, #tpu.memory_space<vmem>>, vector<8x8xf32>,
    return
  }
  func.func @transform_0(%arg0: i32) -> (i32, i32, i32) {
    %c0_i32 = arith.constant 0 : i32
    %c0_i32_0 = arith.constant 0 : i32
    %c0_i32_1 = arith.constant 0 : i32
    return %arg0, %c0_i32, %c0_i32_0 : i32, i32, i32
  }
  func.func @transform_1(%arg0: i32) -> (i32, i32) {
    %c0_i32 = arith.constant 0 : i32
    %c0_i32_0 = arith.constant 0 : i32
    return %arg0, %c0_i32 : i32, i32
  }
  func.func @transform_2(%arg0: i32) -> (i32, i32) {
    %c0_i32 = arith.constant 0 : i32
    %c0_i32_0 = arith.constant 0 : i32
    %c0_i32_1 = arith.constant 0 : i32
    return %c0_i32, %c0_i32_0 : i32, i32
  }
  func.func @transform_3(%arg0: i32) -> (i32, i32) {
    %c0_i32 = arith.constant 0 : i32
    %c0_i32_0 = arith.constant 0 : i32
    %c0_i32_1 = arith.constant 0 : i32
    return %c0_i32, %c0_i32_0 : i32, i32
  }
  func.func @transform_4(%arg0: i32) -> (i32, i32) {
    %c0_i32 = arith.constant 0 : i32
    %c0_i32_0 = arith.constant 0 : i32
    %c0_i32_1 = arith.constant 0 : i32
    return %c0_i32, %c0_i32_0 : i32, i32
  }
  func.func @transform_5(%arg0: i32) -> (i32, i32) {
    %c0_i32 = arith.constant 0 : i32
    %c0_i32_0 = arith.constant 0 : i32
    %c0_i32_1 = arith.constant 0 : i32
    return %c0_i32, %c0_i32_0 : i32, i32
  }
  func.func @transform_6(%arg0: i32) -> (i32, i32) {
    %c0_i32 = arith.constant 0 : i32
    %c0_i32_0 = arith.constant 0 : i32
    return %c0_i32, %arg0 : i32, i32
  }
}

</mosaic_0001>

<bundles_post_ra>
// kernel: tpu_custom_call.1
= control target key start
LH: loop header
LB: loop body
LE: loop exit
PB: predicated region body
PF: predicated region fallthrough
CT: control target
= control target key end

     0   :  { %11 = vsyncpa [#allocation3], 0  ;;  %s931_s0 = inlined_call_operand.hbm [shape: bf16[8,8,128], index: 0, kind: input, shape index: {}]   ;;  %s932_s1 = inlined_call_operand.hbm [shape: bf16[8,128], index: 1, kind: input, shape index: {}]   ;;  %s933_s2 = inlined_call_operand.hbm [shape: bf16[128,128], index: 2, kind: input, shape index: {}]   ;;  %s934_s3 = inlined_call_operand.hbm [shape: bf16[128,128], index: 3, kind: input, shape index: {}]   ;;  %s935_s4 = inlined_call_operand.vmem [shape: f32[1,128], index: 4, kind: input, shape index: {}]   ;;  %s936_s5 = inlined_call_operand.vmem [shape: f32[1,128], index: 5, kind: input, shape index: {}]   ;;  %s937_s6 = inlined_call_operand.hbm [shape: f32[8,8], index: 6, kind: output, shape index: {}]  }
   0x1   :  { %12 = vsyncpa [#allocation6], 0 }
   0x2   :  { %13 = vsyncpa [#allocation9], 0 }
   0x3   :  { %14 = vsyncpa [#allocation4], 0  ;;  %s852_s21 = smov [#allocation5]   ;;  %s853_s23 = smov [#allocation2]  }
   0x4   :  { %s33_s22 = sshll.u32 %s852_s21, 4  ;;  %s20_s24 = sshll.u32 %s853_s23, 4  ;;  %s34_s22 = int_to_ptr.vmem [resolvable:$true] %s33_s22  ;;  %s21_s24 = int_to_ptr.vmem [resolvable:$true] %s20_s24 }
   0x5   :  { %s752_s25 = scalar_lea.vmem %s34_s22, 64  ;;  %p757_p1 = scmp.lt.s32.totalorder %s34_s22, %s34_s22 }
   0x6   :  { %p753_p0 = scmp.ne.s32.totalorder %s34_s22, %s752_s25  ;;  %p758_p2 = scmp.lt.s32.totalorder %s752_s25, %s752_s25 }
   0x8   :  { %p759_p3 = por %p758_p2, %p757_p1 }
   0xa   :  { %p760_p4 = pnand %p759_p3, %p753_p0 }
   0xc   :  { %763 = shalt.err (!%p760_p4)
}
   0xd   :  { %36 = dma.hbm_to_vmem [thread:$0]  %s932_s1, 64, %s34_s22, [#allocation6]  }
   0xe   :  { %s772_s28 = scalar_lea.vmem %s21_s24, 512  ;;  %p777_p6 = scmp.lt.s32.totalorder %s21_s24, %s21_s24 }
   0xf   :  { %p773_p5 = scmp.ne.s32.totalorder %s21_s24, %s772_s28  ;;  %p778_p7 = scmp.lt.s32.totalorder %s772_s28, %s772_s28 }
  0x11   :  { %p779_p8 = por %p778_p7, %p777_p6 }
  0x13   :  { %p780_p9 = pnand %p779_p8, %p773_p5 }
  0x15   :  { %783 = shalt.err (!%p780_p9)
}
  0x16   :  { %s854_s29 = smov 64   ;;  %s855_s30 = smov 4  }
  0x17   :  { %26 = dma.hbm_to_vmem [thread:$0]  %s931_s0, 512, %s21_s24, [#allocation3], %s854_s29, %s854_s29, %s855_s30  }
  0x18   :  { %s856_s9 = smov [#allocation7]   ;;  %s857_s11 = smov [#allocation8]  }
  0x19   :  { %s42_s10 = sshll.u32 %s856_s9, 4  ;;  %s54_s12 = sshll.u32 %s857_s11, 4  ;;  %s43_s10 = int_to_ptr.vmem [resolvable:$true] %s42_s10  ;;  %s55_s12 = int_to_ptr.vmem [resolvable:$true] %s54_s12 }
  0x1a   :  { %s792_s1 = scalar_lea.vmem %s43_s10, 1024  ;;  %p797_p11 = scmp.lt.s32.totalorder %s43_s10, %s43_s10 }
  0x1b   :  { %p793_p10 = scmp.ne.s32.totalorder %s43_s10, %s792_s1  ;;  %p798_p12 = scmp.lt.s32.totalorder %s792_s1, %s792_s1 }
  0x1d   :  { %p799_p13 = por %p798_p12, %p797_p11 }
  0x1f   :  { %p800_p0 = pnand %p799_p13, %p793_p10 }
  0x21   :  { %803 = shalt.err (!%p800_p0)
}
  0x22   :  { %48 = dma.hbm_to_vmem [thread:$0]  %s933_s2, 1024, %s43_s10, [#allocation6], %s854_s29, %s854_s29, %s855_s30  }
  0x23   :  { %s812_s15 = scalar_lea.vmem %s55_s12, 1024  ;;  %p817_p2 = scmp.lt.s32.totalorder %s55_s12, %s55_s12 }
  0x24   :  { %p813_p1 = scmp.ne.s32.totalorder %s55_s12, %s812_s15  ;;  %p818_p3 = scmp.lt.s32.totalorder %s812_s15, %s812_s15 }
  0x26   :  { %p819_p4 = por %p818_p3, %p817_p2 }
  0x28   :  { %p820_p5 = pnand %p819_p4, %p813_p1 }
  0x2a   :  { %823 = shalt.err (!%p820_p5)
}
  0x2b   :  { %60 = dma.hbm_to_vmem [thread:$0]  %s934_s3, 1024, %s55_s12, [#allocation9], %s854_s29, %s854_s29, %s855_s30  }
  0x2c   :  { %844 = dma.done.wait [#allocation3], 512  }
  0x2d   :  { %845 = vsyncadd [#allocation3], 4294966784 }
  0x2e   :  { %846 = dma.done.wait [#allocation6], 1088  }
  0x2f   :  { %847 = vsyncadd [#allocation6], 4294966208 }
  0x30   :  { %848 = dma.done.wait [#allocation9], 1024  }
  0x31   :  { %849 = vsyncadd [#allocation9], 4294966272  ;;  %v858_v0 = vmov 0.0   ;;  %vm859_vm0 = vmmov 0   ;;  %v720_v1 = vld [vmem:[#allocation7 + $0x38] sm:$0xff]   ;;  %v722_v3 = vld [vmem:[#allocation7 + $0x30] sm:$0xff]   ;;  %v356_v22 = vlaneseq }
  0x32   :  { %690 = vmatprep.subr.bf16.mxu1 %v858_v0  ;;  %706 = vmatprep.mubr.msk.bf16.mxu1 %vm859_vm0, %v858_v0  ;;  %v721_v2 = vld [vmem:[#allocation8 + $0x38] sm:$0xff]   ;;  %v723_v4 = vld [vmem:[#allocation8 + $0x30] sm:$0xff]   ;;  %v724_v5 = vld [vmem:[#allocation7 + $0x28] sm:$0xff]   ;;  %v860_v26 = vmov 1966171168   ;;  %vm538_vm1 = vcmask 1041409  }
  0x33   :  { %666 = vmatprep.subr.bf16.mxu0 %v720_v1  ;;  %691 = vmatpush3.bf16.msra.mxu1 %v721_v2  ;;  %v725_v6 = vld [vmem:[#allocation8 + $0x28] sm:$0xff]   ;;  %v726_v7 = vld [vmem:[#allocation7 + $0x20] sm:$0xff]   ;;  %v728_v9 = vld [vmem:[#allocation7 + $0x18] sm:$0xff]   ;;  %v357_v23 = vshrl.u32 %v356_v22, 7  ;;  %v505_v24 = vand.u32 127, %v356_v22  ;;  %v354_v27 = vunpack.c.l.s4 %v860_v26  ;;  %vm540_vm2 = vcmask 1042434  }
  0x34   :  { %667 = vmatpush3.bf16.msra.mxu0 %v720_v1  ;;  %692 = vmatprep.subr.bf16.mxu1 %v858_v0  ;;  %v727_v8 = vld [vmem:[#allocation8 + $0x20] sm:$0xff]   ;;  %v729_v10 = vld [vmem:[#allocation8 + $0x18] sm:$0xff]   ;;  %v730_v11 = vld [vmem:[#allocation7 + $0x10] sm:$0xff]   ;;  %vm542_vm3 = vcmask 1043459   ;;  %vm544_vm4 = vcmask 1044484   ;;  %vm546_vm5 = vcmask 1045509  }
  0x35   :  { %668 = vmatprep.subr.bf16.mxu0 %v722_v3  ;;  %v736_v12 = vld [vmem:[#allocation2] sm:$0xff]   ;;  %v731_v13 = vld [vmem:[#allocation8 + $0x10] sm:$0xff]   ;;  %v732_v14 = vld [vmem:[#allocation7 + $0x8] sm:$0xff]   ;;  %v909_v25 = vsub.s32 %v505_v24, %v357_v23  ;;  %v355_v28 = vunpack.c.0.s8 %v354_v27  ;;  %v403_v38 = vsub.s32 0, %v357_v23  ;;  %vm548_vm6 = vcmask 1046534  }
  0x36   :  { %682 = vmatprep.mubr.bf16.mxu0 %v736_v12  ;;  %v733_v15 = vld [vmem:[#allocation8 + $0x8] sm:$0xff]   ;;  %v734_v16 = vld [vmem:[#allocation7] sm:$0xff]   ;;  %v86_v19 = vld [vmem:[#allocation5] sm:$0xf]  ;;  %vm550_vm7 = vcmask 1047559   ;;  %vm585_vm8 = vcmask 64512  }
  0x37   :  { %693 = vmatpush3.bf16.msra.mxu1 %v723_v4  ;;  %v735_v17 = vld [vmem:[#allocation8] sm:$0xff]   ;;  %v738_v20 = vld [vmem:[#allocation2 + $0x10] sm:$0xff]   ;;  %v739_v21 = vld [vmem:[#allocation2 + $0x18] sm:$0xff]   ;;  %v358_v30 = vsub.s32 %v355_v28, %v357_v23 }
  0x38   :  { %669 = vmatpush3.bf16.msra.mxu0 %v722_v3  ;;  %694 = vmatprep.subr.bf16.mxu1 %v858_v0  ;;  %v737_v18 = vld [vmem:[#allocation2 + $0x8] sm:$0xff]   ;;  %v635_v29 = vld [vmem:[%s935_s4] ss:$0 sm:$0xff] }
  0x39   :  { %670 = vmatprep.subr.bf16.mxu0 %v724_v5  ;;  %v644_v60 = vld [vmem:[%s936_s5] ss:$0 sm:$0xff]  ;;  %s861_s5 = smov [#allocation10]  }
  0x3a   :  { %s612_s18 = sshll.u32 %s861_s5, 4  ;;  %s613_s18 = int_to_ptr.vmem [resolvable:$true] %s612_s18 }
  0x3b   :  { %695 = vmatpush3.bf16.msra.mxu1 %v725_v6  ;;  %s824_s19 = scalar_lea.vmem %s613_s18, 128  ;;  %p829_p7 = scmp.lt.s32.totalorder %s613_s18, %s613_s18 }
  0x3c   :  { %671 = vmatpush3.bf16.msra.mxu0 %v724_v5  ;;  %696 = vmatprep.subr.bf16.mxu1 %v858_v0  ;;  %p825_p6 = scmp.ne.s32.totalorder %s613_s18, %s824_s19  ;;  %p830_p8 = scmp.lt.s32.totalorder %s824_s19, %s824_s19 }
  0x3d   :  { %672 = vmatprep.subr.bf16.mxu0 %v726_v7 }
  0x3e   :  { %p831_p9 = por %p830_p8, %p829_p7 }
  0x3f   :  { %697 = vmatpush3.bf16.msra.mxu1 %v727_v8 }
  0x40   :  { %673 = vmatpush3.bf16.msra.mxu0 %v726_v7  ;;  %698 = vmatprep.subr.bf16.mxu1 %v858_v0  ;;  %p832_p10 = pnand %p831_p9, %p825_p6 }
  0x41   :  { %674 = vmatprep.subr.bf16.mxu0 %v728_v9 }
  0x43   :  { %699 = vmatpush3.bf16.msra.mxu1 %v729_v10 }
  0x44   :  { %675 = vmatpush3.bf16.msra.mxu0 %v728_v9  ;;  %700 = vmatprep.subr.bf16.mxu1 %v858_v0 }
  0x45   :  { %676 = vmatprep.subr.bf16.mxu0 %v730_v11 }
  0x47   :  { %701 = vmatpush3.bf16.msra.mxu1 %v731_v13 }
  0x48   :  { %677 = vmatpush3.bf16.msra.mxu0 %v730_v11  ;;  %702 = vmatprep.subr.bf16.mxu1 %v858_v0 }
  0x49   :  { %678 = vmatprep.subr.bf16.mxu0 %v732_v14 }
  0x4b   :  { %703 = vmatpush3.bf16.msra.mxu1 %v733_v15 }
  0x4c   :  { %679 = vmatpush3.bf16.msra.mxu0 %v732_v14  ;;  %704 = vmatprep.subr.bf16.mxu1 %v858_v0 }
  0x4d   :  { %680 = vmatprep.subr.bf16.mxu0 %v734_v16 }
  0x4f   :  { %705 = vmatpush3.bf16.msra.mxu1 %v735_v17 }
  0x50   :  { %681 = vmatpush3.bf16.msra.mxu0 %v734_v16 }
  0x52   :  { %707 = vmatmul.mubr.bf16.vlgmr.msra.gmra.mxu1 %v86_v19 }
  0x53   :  { %683 = vmatmul.mubr.bf16.vlgmr.msra.gmra.mxu0 %v737_v18 }
  0x54   :  { %686 = vmatprep.mubr.bf16.mxu0 %v738_v20 }
  0x5b   :  { %687 = vmatmul.mubr.bf16.gmra.mxu0 %v739_v21 }
 0x112   :  { %v345_v31 = vpop.f32.mrf.mxu1 }
 0x113   :  { %v684_v32 = vpop.f32.mrf.mxu0  ;;  %v346_v33 = vadd.f32 %v635_v29, %v345_v31 }
 0x114   :  { %v708_v34 = vpop.f32.mrf.mxu1 }
 0x115   :  { %v209_v35 = vpop.f32.mrf.mxu0  ;;  %v352_v36 = vcombine.high %v346_v33, %v346_v33  ;;  %v359_v37 = vrot.slane %v346_v33, %v358_v30 }
 0x116   :  { %v348_v39 = vpop.f32.mrf.mxu1 }
 0x117   :  { %v685_v40 = vpop.f32.mrf.mxu0  ;;  %v366_v41 = vrot.slane %v352_v36, %v358_v30  ;;  %v367_v42 = vcombine.high %v359_v37, %v359_v37  ;;  %v375_v43 = vrot.slane %v359_v37, %v358_v30 }
 0x118   :  { %v709_v44 = vpop.f32.mrf.mxu1 }
 0x119   :  { %v212_v45 = vpop.f32.mrf.mxu0  ;;  %v368_v46 = vcombine.high %v366_v41, %v366_v41  ;;  %v397_v47 = vcombine.high %v375_v43, %v375_v43  ;;  %v404_v48 = vrot.slane %v375_v43, %v403_v38  ;;  %v389_v49 = vrot.slane %v367_v42, %v358_v30 }
 0x11a   :  { %v382_v51 = vrot.slane %v366_v41, %v358_v30 }
 0x11b   :  { %v688_v50 = vpop.f32.mrf.mxu0  ;;  %v412_v52 = vrot.slane %v397_v47, %v403_v38  ;;  %v441_v53 = vadd.f32 %v404_v48, %v209_v35  ;;  %v399_v54 = vcombine.high %v389_v49, %v389_v49  ;;  %v408_v55 = vrot.slane %v389_v49, %v403_v38 }
 0x11c   :  { %v398_v56 = vcombine.high %v382_v51, %v382_v51  ;;  %v420_v58 = vrot.slane %v382_v51, %v403_v38  ;;  %v396_v59 = vrot.slane %v368_v46, %v358_v30 }
 0x11d   :  { %v225_v57 = vpop.f32.mrf.mxu0  ;;  %v443_v61 = vadd.f32 %v684_v32, %v412_v52  ;;  %v449_v62 = vmax.f32 %v441_v53, 0.0  ;;  %v416_v63 = vrot.slane %v399_v54, %v403_v38  ;;  %v442_v0 = vadd.f32 %v408_v55, %v212_v45 }
 0x11e   :  { %v428_v1 = vrot.slane %v398_v56, %v403_v38  ;;  %v445_v2 = vadd.f32 %v420_v58, %v225_v57  ;;  %v400_v4 = vcombine.high %v396_v59, %v396_v59  ;;  %v424_v5 = vrot.slane %v396_v59, %v403_v38 }
 0x11f   :  { %v689_v3 = vpop.f32.mrf.mxu0  ;;  %v451_v6 = vmax.f32 %v443_v61, 0.0  ;;  %v444_v7 = vadd.f32 %v685_v40, %v416_v63  ;;  %v450_v8 = vmax.f32 %v442_v0, 0.0  ;;  %v464_v9 = vmul.f32 %v644_v60, %v449_v62 }
 0x120   :  { %v432_v12 = vrot.slane %v400_v4, %v403_v38  ;;  %v447_v15 = vadd.f32 %v688_v50, %v428_v1  ;;  %v453_v16 = vmax.f32 %v445_v2, 0.0 }
 0x121   :  { %v228_v10 = vpop.f32.mrf.mxu0  ;;  %v452_v11 = vmax.f32 %v444_v7, 0.0  ;;  %472 = vadd.xlane.f32.xlu0 %v464_v9  ;;  %v466_v14 = vmul.f32 %v644_v60, %v451_v6  ;;  %v465_v17 = vmul.f32 %v644_v60, %v450_v8 }
 0x122   :  { %v446_v13 = vadd.f32 %v424_v5, %v228_v10  ;;  %v448_v18 = vadd.f32 %v689_v3, %v432_v12  ;;  %v455_v21 = vmax.f32 %v447_v15, 0.0  ;;  %v468_v22 = vmul.f32 %v644_v60, %v453_v16 }
 0x123   :  { %476 = vadd.xlane.f32.xlu1 %v466_v14  ;;  %v467_v20 = vmul.f32 %v644_v60, %v452_v11 }
 0x124   :  { %v454_v19 = vmax.f32 %v446_v13, 0.0  ;;  %v456_v23 = vmax.f32 %v448_v18, 0.0  ;;  %v470_v26 = vmul.f32 %v644_v60, %v455_v21 }
 0x125   :  { %474 = vadd.xlane.f32.xlu0 %v465_v17 }
 0x126   :  { %v469_v24 = vmul.f32 %v644_v60, %v454_v19  ;;  %v471_v27 = vmul.f32 %v644_v60, %v456_v23 }
 0x127   :  { %478 = vadd.xlane.f32.xlu1 %v467_v20 }
 0x129   :  { %480 = vadd.xlane.f32.xlu0 %v468_v22 }
 0x12b   :  { %482 = vadd.xlane.f32.xlu1 %v469_v24 }
 0x12d   :  { %484 = vadd.xlane.f32.xlu0 %v470_v26 }
 0x12f   :  { %486 = vadd.xlane.f32.xlu1 %v471_v27 }
 0x1aa   :  { %v473_v28 = vpop.xlane.xlu0 %472 }
 0x1ab   :  { %v509_v31 = vrot.slane %v473_v28, %v909_v25 }
 0x1ac   :  { %v477_v29 = vpop.xlane.xlu1 %476 }
 0x1ad   :  { %v517_v33 = vrot.slane %v477_v29, %v909_v25 }
 0x1ae   :  { %v475_v30 = vpop.xlane.xlu0 %474 }
 0x1af   :  { %v513_v32 = vrot.slane %v475_v30, %v909_v25 }
 0x1b0   :  { %v479_v34 = vpop.xlane.xlu1 %478 }
 0x1b1   :  { %v539_v35 = vsel %vm538_vm1, %v513_v32, %v509_v31  ;;  %v521_v36 = vrot.slane %v479_v34, %v909_v25 }
 0x1b2   :  { %v541_v37 = vsel %vm540_vm2, %v517_v33, %v539_v35  ;;  %v481_v38 = vpop.xlane.xlu0 %480 }
 0x1b3   :  { %v543_v39 = vsel %vm542_vm3, %v521_v36, %v541_v37  ;;  %v525_v40 = vrot.slane %v481_v38, %v909_v25 }
 0x1b4   :  { %v483_v41 = vpop.xlane.xlu1 %482 }
 0x1b5   :  { %v545_v42 = vsel %vm544_vm4, %v525_v40, %v543_v39  ;;  %v529_v43 = vrot.slane %v483_v41, %v909_v25 }
 0x1b6   :  { %v485_v44 = vpop.xlane.xlu0 %484 }
 0x1b7   :  { %v533_v45 = vrot.slane %v485_v44, %v909_v25  ;;  %v547_v46 = vsel %vm546_vm5, %v529_v43, %v545_v42 }
 0x1b8   :  { %v487_v47 = vpop.xlane.xlu1 %486 }
 0x1b9   :  { %v537_v48 = vrot.slane %v487_v47, %v909_v25  ;;  %v549_v49 = vsel %vm548_vm6, %v533_v45, %v547_v46 }
 0x1bb   :  { %v551_v50 = vsel %vm550_vm7, %v537_v48, %v549_v49 }
 0x1bc   :  { %553 = vxpose.xlu0.b32.start.end [1/1] (short) (narrow) %v551_v50, 8 }
 0x238   :  { %v569_v51 = vpop.trf.xlu0 }
 0x239   :  { %v586_v52 = vsel %vm585_vm8, %v569_v51, -inf }
 0x23a   :  { %v587_v53 = vrot.slane %v586_v52, 4 }
 0x23c   :  { %v588_v54 = vmax.f32 %v586_v52, %v587_v53 }
 0x23e   :  { %v589_v55 = vrot.slane %v588_v54, 2 }
 0x240   :  { %v590_v56 = vmax.f32 %v588_v54, %v589_v55 }
 0x242   :  { %v591_v57 = vrot.slane %v590_v56, 1 }
 0x244   :  { %v592_v58 = vmax.f32 %v590_v56, %v591_v57 }
 0x246   :  { %v593_v59 = vsub.f32 %v569_v51, %v592_v58 }
 0x248   :  { %v594_v60 = vmul.f32 1.442695, %v593_v59 }
 0x24a   :  { %740 = vpow2.f32 %v594_v60 }
 0x257   :  { %v741_v61 = vpop.eup %740 }
 0x258   :  { %v596_v62 = vsel %vm585_vm8, %v741_v61, 0.0 }
 0x259   :  { %v597_v25 = vrot.slane %v596_v62, 4 }
 0x25b   :  { %v598_v63 = vadd.f32 %v597_v25, %v596_v62 }
 0x25d   :  { %v599_v0 = vrot.slane %v598_v63, 2 }
 0x25f   :  { %v600_v1 = vadd.f32 %v599_v0, %v598_v63 }
 0x261   :  { %v601_v2 = vrot.slane %v600_v1, 1 }
 0x263   :  { %v602_v3 = vadd.f32 %v601_v2, %v600_v1 }
 0x265   :  { %742 = vrcp.f32 %v602_v3 }
 0x272   :  { %v743_v4 = vpop.eup %742 }
 0x273   :  { %v604_v5 = vmul.f32 %v743_v4, %v741_v61 }
 0x275   :  { %605 = vst.msk [vmem:[#allocation10] sm:$0xff] %vm585_vm8, %v604_v5 }
 0x276   :  { %835 = shalt.err (!%p832_p10)
}
 0x277   :  { %615 = dma.vmem_to_hbm [thread:$0]  %s613_s18, 128, %s937_s6, [#allocation4]  }
 0x278   :  { %850 = dma.done.wait [#allocation4], 128  }
 0x279   :  { %851 = vsyncadd [#allocation4], 4294967168 }
 0x27a   :  { %619 = vsyncpa [#allocation3], 1 }
 0x27b   :  { %620 = vsyncpa [#allocation6], 1 }
 0x27c   :  { %621 = vsyncpa [#allocation9], 1 }
 0x27d   :  { %622 = vsyncpa [#allocation4], 1 }

</bundles_post_ra>
